<compile_context>
chip_gen: v6e
topology: v6e:2x2x1
jax: 0.10.0
libtpu: 0.0.40
codegen_flags: <defaults>
</compile_context>

<pallas_src>
import math

import jax
import jax.numpy as jnp
from jax.experimental import pallas as pl
from jax.experimental.pallas import tpu as pltpu

_LANES = 128
_SUBLANES = 8
_MAX_BLOCK_ROWS = 512  # (512,128) f32 tile = 256 KiB per buffer


# ----------------------------------------------------------------------------
# Kernel
# ----------------------------------------------------------------------------
def _make_fused_kernel(beta: float, limit_l: float, limit_r: float,
                       eps: float, bias: float, block_rows: int):
    scale = limit_r - limit_l
    fast_path = float(beta) == 1.0

    def kernel(seed_ref, log_alpha_ref, mask_ref, l0_ref):
        i = pl.program_id(0)

        @pl.when(i == 0)
        def _init():
            l0_ref[0] = jnp.float32(0.0)

        la = log_alpha_ref[...]
        shape = la.shape

        # --- Counter-based PRNG (lowbias32-style hash), pure integer VPU ops.
        # Each element hashes (global flat index, seed) so every grid tile and
        # every element gets independent uniform bits.
        row = jax.lax.broadcasted_iota(jnp.int32, shape, 0).astype(jnp.uint32)
        lane = jax.lax.broadcasted_iota(jnp.int32, shape, 1).astype(jnp.uint32)
        base = (i * block_rows).astype(jnp.uint32)
        ctr = (base + row) * jnp.uint32(shape[1]) + lane
        x = ctr * jnp.uint32(0x9E3779B9)
        x = x + seed_ref[0].astype(jnp.uint32) * jnp.uint32(0x85EBCA77)
        x = x ^ (x >> jnp.uint32(16))
        x = x * jnp.uint32(0x7FEB352D)
        x = x ^ (x >> jnp.uint32(15))
        x = x * jnp.uint32(0x846CA68B)
        x = x ^ (x >> jnp.uint32(16))

        # 24 high-quality bits -> uniform in [0, 1), then affine to (eps, 1-eps).
        u24 = (x >> jnp.uint32(8)).astype(jnp.int32).astype(jnp.float32)
        u01 = u24 * jnp.float32(1.0 / (1 << 24))
        u = jnp.float32(eps) + u01 * jnp.float32(1.0 - 2.0 * eps)

        if fast_path:
            # sigmoid(logit(u) + a) = u / (u + (1-u) * exp(-a))
            s = u / (u + (1.0 - u) * jnp.exp(-la))
        else:
            logit_u = jnp.log(u) - jnp.log1p(-u)
            s = jax.nn.sigmoid((logit_u + la) / jnp.float32(beta))

        s = s * jnp.float32(scale) + jnp.float32(limit_l)
        mask_ref[...] = jnp.clip(s, 0.0, 1.0)

        # Fused expected-L0 norm: sigmoid(log_alpha + bias).sum()
        l0_ref[0] += jnp.sum(jax.nn.sigmoid(la + jnp.float32(bias)))

    return kernel


# ----------------------------------------------------------------------------
# Wrapper
# ----------------------------------------------------------------------------
def _slab_layout(n_in: int):
    """Choose padded (rows, 128) slab layout and row-tile size."""
    rows_min = pl.cdiv(n_in, _LANES)
    if rows_min <= _MAX_BLOCK_ROWS:
        block_rows = pl.cdiv(rows_min, _SUBLANES) * _SUBLANES
        rows = block_rows
    else:
        block_rows = _MAX_BLOCK_ROWS
        rows = pl.cdiv(rows_min, block_rows) * block_rows
    return rows, block_rows


def hardconcrete_forward_and_l0(log_alpha: jax.Array,
                                seed: int,
                                *,
                                temperature: float = 1.0,
                                stretch: float = 0.1,
                                eps: float = 1e-6):
    """Training-mode HardConcrete: returns (mask[n_in], expected_l0_norm)."""
    n_in = log_alpha.shape[0]
    limit_l = -stretch
    limit_r = 1.0 + stretch
    bias = -temperature * math.log(-limit_l / limit_r)

    rows, block_rows = _slab_layout(n_in)
    n_pad = rows * _LANES

    la = log_alpha.astype(jnp.float32)
    if n_pad != n_in:
        # Padded logits are very negative: mask clamps to 0, l0 contribution ~0.
        la = jnp.pad(la, (0, n_pad - n_in), constant_values=-30.0)
    slab = la.reshape(rows, _LANES)
    num_tiles = rows // block_rows

    kernel = _make_fused_kernel(temperature, limit_l, limit_r, eps, bias, block_rows)
    seed_arr = jnp.asarray([seed], dtype=jnp.int32)

    cost = pl.CostEstimate(
        flops=25 * n_pad,
        transcendentals=3 * n_pad,
        bytes_accessed=8 * n_pad,
    )

    mask_slab, l0 = pl.pallas_call(
        kernel,
        grid=(num_tiles,),
        out_shape=(
            jax.ShapeDtypeStruct((rows, _LANES), jnp.float32),
            jax.ShapeDtypeStruct((1,), jnp.float32),
        ),
        in_specs=[
            pl.BlockSpec(memory_space=pltpu.MemorySpace.SMEM),     # seed scalar
            pl.BlockSpec((block_rows, _LANES), lambda i: (i, 0)),  # log_alpha tile
        ],
        out_specs=(
            pl.BlockSpec((block_rows, _LANES), lambda i: (i, 0)),  # mask tile
            pl.BlockSpec(memory_space=pltpu.MemorySpace.SMEM),     # fused L0 sum
        ),
        compiler_params=pltpu.CompilerParams(
            # L0 sum accumulates across tiles -> reduction axis.
            dimension_semantics=("arbitrary",),
        ),
        cost_estimate=cost,
    )(seed_arr, slab)

    return mask_slab.reshape(-1)[:n_in], l0[0]


# ----------------------------------------------------------------------------
# Main
# ----------------------------------------------------------------------------
if __name__ == "__main__":
    # Module hyperparameters (defaults from the PyTorch module).
    n_in = 1024
    init_mean = 0.5
    init_std = 0.01
    temperature = 1.0
    stretch = 0.1
    eps = 1e-6

    # Deterministic parameter init, mirroring reset_parameters():
    #   log_alpha ~ Normal(log(1 - init_mean) - log(init_mean), init_std)
    key = jax.random.PRNGKey(0)
    mean = math.log(1.0 - init_mean) - math.log(init_mean)  # = 0.0 for init_mean=0.5
    log_alpha = mean + init_std * jax.random.normal(key, (n_in,), dtype=jnp.float32)

    mask, l0 = hardconcrete_forward_and_l0(
        log_alpha, seed=1234, temperature=temperature, stretch=stretch, eps=eps
    )
    mask = jax.block_until_ready(mask)
    l0 = jax.block_until_ready(l0)

    # Sanity checks.
    bias = -temperature * math.log(stretch / (1.0 + stretch))
    l0_ref = jnp.sum(jax.nn.sigmoid(log_alpha + bias))

    assert mask.shape == (n_in,)
    assert bool(jnp.all(jnp.isfinite(mask)))
    assert bool(jnp.all(mask >= 0.0)) and bool(jnp.all(mask <= 1.0))
    assert bool(jnp.isfinite(l0))
    assert bool(jnp.allclose(l0, l0_ref, rtol=1e-3, atol=1e-3)), (float(l0), float(l0_ref))
    # With log_alpha ~ 0 and stretch=0.1, the sampled mask mean should be ~0.5.
    m = float(jnp.mean(mask))
    assert 0.35 < m < 0.65, m

    print("KERNEL_OK")
</pallas_src>

<mosaic_0001>
module attributes {stable_mosaic.version = 11 : i64} {
  func.func @kernel(%arg0: i32, %arg1: memref<1xi32, #tpu.memory_space<smem>>, %arg2: memref<8x128xf32, #tpu.memory_space<vmem>>, %arg3: memref<8x128xf32, #tpu.memory_space<vmem>>, %arg4: memref<1xf32, #tpu.memory_space<smem>>) attributes {dimension_semantics = [#tpu.dimension_semantics<arbitrary>], iteration_bounds = array<i64: 1>, scalar_prefetch = 0 : i64, scratch_operands = 0 : i64, tpu.core_type = #tpu.core_type<tc>, window_params = [{transform_indices = @transform_0, window_bounds = array<i64: 1>}, {transform_indices = @transform_1, window_bounds = array<i64: 8, 128>}, {transform_indices = @transform_2, window_bounds = array<i64: 8, 128>}, {transform_indices = @transform_3, window_bounds = array<i64: 1>}]} {
    %c0_i32 = arith.constant 0 : i32
    %0 = arith.cmpi eq, %arg0, %c0_i32 : i32
    %1 = arith.extui %0 : i1 to i32
    %c0_i32_0 = arith.constant 0 : i32
    %2 = arith.cmpi ne, %1, %c0_i32_0 : i32
    scf.if %2 {
      %cst_20 = arith.constant 0.000000e+00 : f32
      %c0_21 = arith.constant 0 : index
      %71 = memref.load %arg4[%c0_21] : memref<1xf32, #tpu.memory_space<smem>>
      memref.store %cst_20, %arg4[%c0_21] : memref<1xf32, #tpu.memory_space<smem>>
    } else {
    }
    %c0 = arith.constant 0 : index
    %c0_1 = arith.constant 0 : index
    %3 = vector.load %arg2[%c0, %c0_1] : memref<8x128xf32, #tpu.memory_space<vmem>>, vector<8x128xf32>
    %4 = tpu.iota {dimensions = array<i32: 0>} : vector<8x128xi32>
    %5 = tpu.iota {dimensions = array<i32: 1>} : vector<8x128xi32>
    %c8_i32 = arith.constant 8 : i32
    %6 = arith.muli %arg0, %c8_i32 : i32
    %7 = vector.broadcast %6 : i32 to vector<8x128xi32>
    %8 = arith.addi %7, %4 : vector<8x128xi32>
    %c128_i32 = arith.constant 128 : i32
    %9 = vector.broadcast %c128_i32 : i32 to vector<8x128xi32>
    %10 = arith.muli %8, %9 : vector<8x128xi32>
    %11 = arith.addi %10, %5 : vector<8x128xi32>
    %c-1640531527_i32 = arith.constant -1640531527 : i32
    %12 = vector.broadcast %c-1640531527_i32 : i32 to vector<8x128xi32>
    %13 = arith.muli %11, %12 : vector<8x128xi32>
    %c0_2 = arith.constant 0 : index
    %14 = memref.load %arg1[%c0_2] : memref<1xi32, #tpu.memory_space<smem>>
    %c-2048144777_i32 = arith.constant -2048144777 : i32
    %15 = arith.muli %14, %c-2048144777_i32 : i32
    %16 = vector.broadcast %15 : i32 to vector<8x128xi32>
    %17 = arith.addi %13, %16 : vector<8x128xi32>
    %c16_i32 = arith.constant 16 : i32
    %18 = vector.broadcast %c16_i32 : i32 to vector<8x128xi32>
    %19 = arith.shrui %17, %18 : vector<8x128xi32>
    %20 = arith.xori %17, %19 : vector<8x128xi32>
    %c2146121005_i32 = arith.constant 2146121005 : i32
    %21 = vector.broadcast %c2146121005_i32 : i32 to vector<8x128xi32>
    %22 = arith.muli %20, %21 : vector<8x128xi32>
    %c15_i32 = arith.constant 15 : i32
    %23 = vector.broadcast %c15_i32 : i32 to vector<8x128xi32>
    %24 = arith.shrui %22, %23 : vector<8x128xi32>
    %25 = arith.xori %22, %24 : vector<8x128xi32>
    %c-2073254261_i32 = arith.constant -2073254261 : i32
    %26 = vector.broadcast %c-2073254261_i32 : i32 to vector<8x128xi32>
    %27 = arith.muli %25, %26 : vector<8x128xi32>
    %c16_i32_3 = arith.constant 16 : i32
    %28 = vector.broadcast %c16_i32_3 : i32 to vector<8x128xi32>
    %29 = arith.shrui %27, %28 : vector<8x128xi32>
    %30 = arith.xori %27, %29 : vector<8x128xi32>
    %c8_i32_4 = arith.constant 8 : i32
    %31 = vector.broadcast %c8_i32_4 : i32 to vector<8x128xi32>
    %32 = arith.shrui %30, %31 : vector<8x128xi32>
    %33 = arith.sitofp %32 : vector<8x128xi32> to vector<8x128xf32>
    %cst = arith.constant 5.96046448E-8 : f32
    %34 = vector.broadcast %cst : f32 to vector<8x128xf32>
    %35 = arith.mulf %33, %34 : vector<8x128xf32>
    %cst_5 = arith.constant 0.999997973 : f32
    %36 = vector.broadcast %cst_5 : f32 to vector<8x128xf32>
    %37 = arith.mulf %35, %36 : vector<8x128xf32>
    %cst_6 = arith.constant 9.99999997E-7 : f32
    %38 = vector.broadcast %cst_6 : f32 to vector<8x128xf32>
    %39 = arith.addf %38, %37 : vector<8x128xf32>
    %cst_7 = arith.constant 1.000000e+00 : f32
    %40 = vector.broadcast %cst_7 : f32 to vector<8x128xf32>
    %41 = arith.subf %40, %39 : vector<8x128xf32>
    %cst_8 = arith.constant 0.000000e+00 : f32
    %42 = vector.broadcast %cst_8 : f32 to vector<8x128xf32>
    %43 = arith.subf %42, %3 : vector<8x128xf32>
    %44 = math.exp %43 : vector<8x128xf32>
    %45 = arith.mulf %41, %44 : vector<8x128xf32>
    %46 = arith.addf %39, %45 : vector<8x128xf32>
    %47 = arith.divf %39, %46 : vector<8x128xf32>
    %cst_9 = arith.constant 1.200000e+00 : f32
    %48 = vector.broadcast %cst_9 : f32 to vector<8x128xf32>
    %49 = arith.mulf %47, %48 : vector<8x128xf32>
    %cst_10 = arith.constant -1.000000e-01 : f32
    %50 = vector.broadcast %cst_10 : f32 to vector<8x128xf32>
    %51 = arith.addf %49, %50 : vector<8x128xf32>
    %cst_11 = arith.constant 0.000000e+00 : f32
    %cst_12 = arith.constant 1.000000e+00 : f32
    %52 = vector.broadcast %cst_11 : f32 to vector<8x128xf32>
    %53 = arith.maximumf %52, %51 : vector<8x128xf32>
    %54 = vector.broadcast %cst_12 : f32 to vector<8x128xf32>
    %55 = arith.minimumf %54, %53 : vector<8x128xf32>
    %c0_13 = arith.constant 0 : index
    %c0_14 = arith.constant 0 : index
    %56 = vector.load %arg3[%c0_13, %c0_14] : memref<8x128xf32, #tpu.memory_space<vmem>>, vector<8x128xf32>
    tpu.vector_store %arg3[%c0_13, %c0_14], %55 {strides = array<i32>} : memref<8x128xf32, #tpu.memory_space<vmem>>, vector<8x128xf32>,
    %c0_15 = arith.constant 0 : index
    %57 = memref.load %arg4[%c0_15] : memref<1xf32, #tpu.memory_space<smem>>
    %cst_16 = arith.constant 2.39789534 : f32
    %58 = vector.broadcast %cst_16 : f32 to vector<8x128xf32>
    %59 = arith.addf %3, %58 : vector<8x128xf32>
    %60 = arith.negf %59 : vector<8x128xf32>
    %61 = math.exp %60 : vector<8x128xf32>
    %cst_17 = arith.constant 1.000000e+00 : f32
    %62 = vector.broadcast %cst_17 : f32 to vector<8x128xf32>
    %63 = arith.addf %62, %61 : vector<8x128xf32>
    %64 = arith.divf %62, %63 : vector<8x128xf32>
    %65 = vector.shape_cast %64 : vector<8x128xf32> to vector<1x8x128xf32>
    %cst_18 = arith.constant dense<0.000000e+00> : vector<1xf32>
    %66 = vector.multi_reduction <add>, %65, %cst_18 [1, 2] : vector<1x8x128xf32> to vector<1xf32>
    %67 = vector.shape_cast %66 : vector<1xf32> to vector<1x1x1xf32>
    %68 = vector.extract %67[0, 0, 0] : f32 from vector<1x1x1xf32>
    %69 = arith.addf %57, %68 : f32
    %c0_19 = arith.constant 0 : index
    %70 = memref.load %arg4[%c0_19] : memref<1xf32, #tpu.memory_space<smem>>
    memref.store %69, %arg4[%c0_19] : memref<1xf32, #tpu.memory_space<smem>>
    return
  }
  func.func @transform_0(%arg0: i32) -> i32 {
    %c0_i32 = arith.constant 0 : i32
    %c0_i32_0 = arith.constant 0 : i32
    return %c0_i32 : i32
  }
  func.func @transform_1(%arg0: i32) -> (i32, i32) {
    %c0_i32 = arith.constant 0 : i32
    %c0_i32_0 = arith.constant 0 : i32
    return %arg0, %c0_i32 : i32, i32
  }
  func.func @transform_2(%arg0: i32) -> (i32, i32) {
    %c0_i32 = arith.constant 0 : i32
    %c0_i32_0 = arith.constant 0 : i32
    return %arg0, %c0_i32 : i32, i32
  }
  func.func @transform_3(%arg0: i32) -> i32 {
    %c0_i32 = arith.constant 0 : i32
    %c0_i32_0 = arith.constant 0 : i32
    return %c0_i32 : i32
  }
}

</mosaic_0001>

<bundles_post_ra>
// kernel: tpu_custom_call.1
= control target key start
LH: loop header
LB: loop body
LE: loop exit
PB: predicated region body
PF: predicated region fallthrough
CT: control target
= control target key end

     0   :  { %10 = vsyncpa [#allocation4], 0  ;;  %s227_s0 = inlined_call_operand.<no memory space> [shape: s32[1], index: 0, kind: input, shape index: {}]   ;;  %s228_s1 = inlined_call_operand.hbm [shape: f32[8,128], index: 1, kind: input, shape index: {}]   ;;  %s229_s2 = inlined_call_operand.hbm [shape: f32[8,128], index: 2, kind: output, shape index: {0}]   ;;  %s230_s3 = inlined_call_operand.hbm [shape: f32[1], index: 3, kind: output, shape index: {1}]  }
   0x1   :  { %11 = vsyncpa [#allocation5], 0 }
   0x2   :  { %12 = vsyncpa [#allocation6], 0  ;;  %s192_s12 = smov [#allocation3]  }
   0x3   :  { %s21_s13 = sshll.u32 %s192_s12, 4  ;;  %s22_s13 = int_to_ptr.vmem [resolvable:$true] %s21_s13 }
   0x4   :  { %s146_s14 = scalar_lea.vmem %s22_s13, 128  ;;  %p151_p1 = scmp.lt.s32.totalorder %s22_s13, %s22_s13 }
   0x5   :  { %p147_p0 = scmp.ne.s32.totalorder %s22_s13, %s146_s14  ;;  %p152_p2 = scmp.lt.s32.totalorder %s146_s14, %s146_s14 }
   0x7   :  { %p153_p3 = por %p152_p2, %p151_p1 }
   0x9   :  { %p154_p4 = pnand %p153_p3, %p147_p0 }
   0xb   :  { %157 = shalt.err (!%p154_p4)
}
   0xc   :  { %24 = dma.hbm_to_vmem [thread:$0]  %s228_s1, 128, %s22_s13, [#allocation4]  }
   0xd   :  { %186 = dma.done.wait [#allocation4], 128  }
   0xe   :  { %187 = vsyncadd [#allocation4], 4294967168  ;;  %v34_v0 = vld [vmem:[#allocation3] sm:$0xff]  ;;  %v35_v6 = vlaneseq  ;;  %s46_s1 = smul.u32 2246822519, %s227_s0  ;;  %s193_s0 = smov [#allocation7]  }
   0xf   :  { %v76_v1 = vadd.f32 2.3978953, %v34_v0  ;;  %v63_v16 = vsub.f32 0.0, %v34_v0  ;;  %s101_s19 = sshll.u32 %s193_s0, 4  ;;  %s102_s19 = int_to_ptr.vmem [resolvable:$true] %s101_s19 }
  0x10   :  { %v36_v7 = vshrl.u32 %v35_v6, 7  ;;  %v38_v8 = vand.u32 127, %v35_v6  ;;  %v47_v12 = vstv %s46_s1  ;;  %s158_s20 = scalar_lea.vmem %s102_s19, 128  ;;  %p163_p6 = scmp.lt.s32.totalorder %s102_s19, %s102_s19 }
  0x11   :  { %v123_v2 = vmul.f32 -1.442695, %v76_v1  ;;  %v64_v19 = vmul.f32 1.442695, %v63_v16  ;;  %p159_p5 = scmp.ne.s32.totalorder %s102_s19, %s158_s20  ;;  %p164_p7 = scmp.lt.s32.totalorder %s158_s20, %s158_s20 }
  0x12   :  { %v42_v9 = vmul.u32 128, %v36_v7 }
  0x13   :  { %130 = vpow2.f32 %v123_v2  ;;  %p165_p8 = por %p164_p7, %p163_p6 }
  0x14   :  { %v43_v10 = vadd.s32 %v42_v9, %v38_v8 }
  0x15   :  { %p166_p9 = pnand %p165_p8, %p159_p5 }
  0x16   :  { %v44_v11 = vmul.u32 2654435769, %v43_v10 }
  0x18   :  { %v48_v13 = vadd.s32 %v47_v12, %v44_v11 }
  0x1a   :  { %v49_v14 = vshrl.u32 %v48_v13, 16 }
  0x1c   :  { %v50_v15 = vxor.u32 %v49_v14, %v48_v13 }
  0x1e   :  { %v51_v17 = vmul.u32 2146121005, %v50_v15 }
  0x20   :  { %v131_v3 = vpop.eup %130  ;;  %v52_v18 = vshrl.u32 %v51_v17, 15 }
  0x21   :  { %v80_v4 = vadd.f32 1.0, %v131_v3 }
  0x22   :  { %v53_v20 = vxor.u32 %v52_v18, %v51_v17 }
  0x23   :  { %132 = vrcp.f32 %v80_v4 }
  0x24   :  { %v54_v21 = vmul.u32 2221713035, %v53_v20  ;;  %134 = vpow2.f32 %v64_v19 }
  0x26   :  { %v55_v22 = vshrl.u32 %v54_v21, 16 }
  0x28   :  { %v56_v23 = vxor.u32 %v55_v22, %v54_v21 }
  0x2a   :  { %v57_v24 = vshrl.u32 %v56_v23, 8 }
  0x2c   :  { %v58_v25 = vcvt.s32.f32 %v57_v24 }
  0x2e   :  { %v59_v26 = vmul.f32 5.9604645e-08, %v58_v25 }
  0x30   :  { %v133_v5 = vpop.eup %132  ;;  %v60_v27 = vmul.f32 0.999998, %v59_v26 }
  0x31   :  { %83 = vadd.xlane.f32.xlu0 %v133_v5  ;;  %v135_v29 = vpop.eup %134 }
  0x32   :  { %v61_v28 = vadd.f32 1e-06, %v60_v27 }
  0x34   :  { %v62_v30 = vsub.f32 1.0, %v61_v28 }
  0x36   :  { %v66_v31 = vmul.f32 %v135_v29, %v62_v30 }
  0x38   :  { %v67_v32 = vadd.f32 %v66_v31, %v61_v28 }
  0x3a   :  { %136 = vrcp.f32 %v67_v32 }
  0x47   :  { %v137_v33 = vpop.eup %136 }
  0x48   :  { %v69_v34 = vmul.f32 %v137_v33, %v61_v28 }
  0x4a   :  { %v70_v35 = vmul.f32 1.2, %v69_v34 }
  0x4c   :  { %v71_v36 = vadd.f32 -0.1, %v70_v35 }
  0x4e   :  { %v72_v37 = vmax.f32 %v71_v36, 0.0 }
  0x50   :  { %v73_v38 = vmin.f32 %v72_v37, 1.0 }
  0x52   :  { %74 = vst [vmem:[#allocation7] sm:$0xff] %v73_v38 }
  0x53   :  { %169 = shalt.err (!%p166_p9)
}
  0x54   :  { %104 = dma.vmem_to_hbm [thread:$0]  %s102_s19, 128, %s229_s2, [#allocation5]  }
  0x55   :  { %s194_s24 = smov [#allocation8]  }
  0xba   :  { %v84_v39 = vpop.xlane.xlu0 %83 }
  0xbb   :  { %v85_v40 = vrot.slane %v84_v39, 4 }
  0xbd   :  { %v86_v41 = vadd.f32 %v85_v40, %v84_v39 }
  0xbf   :  { %v87_v42 = vrot.slane %v86_v41, 2 }
  0xc1   :  { %v88_v43 = vadd.f32 %v87_v42, %v86_v41 }
  0xc3   :  { %v89_v44 = vrot.slane %v88_v43, 1 }
  0xc5   :  { %v90_v45 = vadd.f32 %v89_v44, %v88_v43 }
  0xc7   :  { %124 = vpush %v90_v45 }
  0xf8   :  { %s125_s23 = spop %124 }
  0xf9   :  { %94 = sst [smem:[#allocation8]] %s125_s23 }
  0xfa   :  { %112 = dma.smem_to_hbm %s194_s24, 16, %s230_s3, [#allocation6]  }
  0xfb   :  { %188 = dma.done.wait [#allocation5], 128  }
  0xfc   :  { %189 = vsyncadd [#allocation5], 4294967168 }
  0xfd   :  { %190 = dma.done.wait [#allocation6], 16  }
  0xfe   :  { %191 = vsyncadd [#allocation6], 4294967280 }
  0xff   :  { %119 = sfence }
 0x100   :  { %120 = vsyncpa [#allocation4], 1 }
 0x101   :  { %121 = vsyncpa [#allocation5], 1 }
 0x102   :  { %122 = vsyncpa [#allocation6], 1 }

</bundles_post_ra>
